<compile_context>
chip_gen: v7x
topology: tpu7x:2x2x1
jax: 0.10.0
libtpu: 0.0.40
codegen_flags: <defaults>
</compile_context>

<pallas_src>
import functools
import math

import jax
import jax.numpy as jnp
from jax.experimental import pallas as pl
from jax.experimental.pallas import tpu as pltpu

D_K = 64
D_V = 64
SCALE = 1.0 / math.sqrt(D_K)
NEG_BIG = -1.0e9  # matches torch masked_fill_(attn_mask, -1000000000.0)

_SUBLANE_ALIGN = 32             # int8 packs 32 sublanes, bf16 packs 16 -> use 32
_VMEM_BUDGET = 40 * 1024 * 1024  # per-step scratch budget used to pick tq


def _round_up(x, m):
    return (x + m - 1) // m * m


def _sdpa_kernel(*refs, has_mask: bool, return_attn: bool):
    it = iter(refs)
    q_ref = next(it)                         # (1, tq, d_k)   native dtype
    kt_ref = next(it)                        # (1, d_k, Sk)   pre-transposed K
    v_ref = next(it)                         # (1, Sk, d_v)
    m_ref = next(it) if has_mask else None   # (1, tq, Sk)    int8
    ctx_ref = next(it)                       # (1, tq, d_v)
    attn_ref = next(it) if return_attn else None  # (1, tq, Sk)

    q = q_ref[0]
    kt = kt_ref[0]
    v = v_ref[0]

    # scores = Q @ K^T / sqrt(d_k).  NN-form matmul (K already transposed in
    # the wrapper), native-dtype operands, f32 accumulation on the MXU.
    s = jnp.dot(q, kt, preferred_element_type=jnp.float32) * SCALE  # (tq, Sk) f32

    if has_mask:
        s = jnp.where(m_ref[0] != 0, NEG_BIG, s)

    # Numerically stable softmax over the key axis.  One per-row reciprocal
    # instead of a (tq, Sk) divide; the row scale is applied after attn @ V.
    m_row = jnp.max(s, axis=-1, keepdims=True)
    p = jnp.exp(s - m_row)                          # (tq, Sk) f32, unnormalized
    l_row = jnp.sum(p, axis=-1, keepdims=True)      # (tq, 1)
    inv = pl.reciprocal(l_row)                      # exact -> matches torch softmax

    # context = softmax(scores) @ V == (p @ V) * inv, f32 accumulation.
    # Probs are cast to V's dtype so bf16 inputs keep the matmul at bf16 rate.
    ctx = jnp.dot(p.astype(v.dtype), v, preferred_element_type=jnp.float32) * inv

    ctx_ref[0] = ctx.astype(ctx_ref.dtype)
    if return_attn:
        attn_ref[0] = (p * inv).astype(attn_ref.dtype)


def _mask_group_divisor(q_lead, m_lead):
    """If the mask's leading dims are q's leading dims followed only by
    broadcast (size-1) dims, return the product of that broadcast suffix so
    that mask_group = group // divisor.  Otherwise return None."""
    if len(m_lead) > len(q_lead):
        return None
    m_lead = (1,) * (len(q_lead) - len(m_lead)) + tuple(m_lead)
    j = len(q_lead)
    while j > 0 and m_lead[j - 1] == 1:
        j -= 1
    if tuple(m_lead[:j]) != tuple(q_lead[:j]):
        return None
    div = 1
    for d in q_lead[j:]:
        div *= int(d)
    return div


@functools.partial(jax.jit, static_argnames=("tq", "return_attn"))
def scaled_dot_product_attention(q, k, v, attn_mask=None, *, tq=256,
                                 return_attn=True):
    """Q: [..., Sq, d_k], K: [..., Sk, d_k], V: [..., Sk, d_v].

    attn_mask (optional): broadcastable to [..., Sq, Sk]; nonzero/True = masked.
    Returns (context, attn) like the PyTorch module, or just context when
    return_attn=False (skips the attn HBM writeback).
    """
    *lead, Sq, dk = q.shape
    Sk = k.shape[-2]
    dv = v.shape[-1]
    G = int(math.prod(lead)) if lead else 1

    q3 = q.reshape(G, Sq, dk)
    kt3 = jnp.swapaxes(k, -1, -2).reshape(G, dk, Sk)   # one-time transpose -> NN matmul
    v3 = v.reshape(G, Sk, dv)

    has_mask = attn_mask is not None
    div = 1
    m3 = None
    if has_mask:
        m_lead = tuple(attn_mask.shape[:-2])
        div = _mask_group_divisor(tuple(lead), m_lead)
        mask01 = jnp.not_equal(attn_mask, 0).astype(jnp.int8)
        if div is None:
            # General broadcast pattern: materialize the full mask.
            div = 1
            m3 = jnp.broadcast_to(mask01, (*lead, Sq, Sk)).reshape(G, Sq, Sk)
        else:
            # Head-broadcast (or fully shared) mask: keep it un-replicated and
            # index it with group // div inside the BlockSpec.
            m3 = jnp.broadcast_to(mask01, (*m_lead, Sq, Sk)).reshape(-1, Sq, Sk)
    Gm = m3.shape[0] if has_mask else 0

    itemsize = q.dtype.itemsize
    attn_itemsize = itemsize  # attn is emitted in the input dtype (bf16 stays bf16)

    # Query tiling: 32-aligned tiles, shrunk if the per-step VMEM estimate
    # exceeds the budget (keeps long-Sk configs inside v7x's 64 MiB VMEM).
    tq_eff = _round_up(min(tq, _round_up(Sq, _SUBLANE_ALIGN)), _SUBLANE_ALIGN)

    def vmem_estimate(t):
        b = 2 * t * dk * itemsize            # Q tile (double-buffered)
        b += 2 * Sk * dk * itemsize          # K^T (resident per group)
        b += 2 * Sk * dv * itemsize          # V   (resident per group)
        if has_mask:
            b += 2 * t * Sk                  # int8 mask tile
        b += 2 * t * dv * itemsize           # ctx out
        if return_attn:
            b += 2 * t * Sk * attn_itemsize  # attn out
        b += 3 * t * Sk * 4                  # f32 scores / probs / attn temps
        return b

    while tq_eff > _SUBLANE_ALIGN and vmem_estimate(tq_eff) > _VMEM_BUDGET:
        tq_eff = max(_SUBLANE_ALIGN, (tq_eff // 2) // _SUBLANE_ALIGN * _SUBLANE_ALIGN)

    Sq_pad = _round_up(Sq, tq_eff)
    if Sq_pad != Sq:
        q3 = jnp.pad(q3, ((0, 0), (0, Sq_pad - Sq), (0, 0)))
        if has_mask:
            m3 = jnp.pad(m3, ((0, 0), (0, Sq_pad - Sq), (0, 0)))

    grid = (G, Sq_pad // tq_eff)

    in_specs = [
        pl.BlockSpec((1, tq_eff, dk), lambda g, i: (g, i, 0)),   # Q tile
        pl.BlockSpec((1, dk, Sk), lambda g, i: (g, 0, 0)),       # K^T, resident per group
        pl.BlockSpec((1, Sk, dv), lambda g, i: (g, 0, 0)),       # V, resident per group
    ]
    args = [q3, kt3, v3]
    if has_mask:
        in_specs.append(
            pl.BlockSpec((1, tq_eff, Sk), lambda g, i, d=div: (g // d, i, 0)))
        args.append(m3)

    out_specs = [pl.BlockSpec((1, tq_eff, dv), lambda g, i: (g, i, 0))]
    out_shape = [jax.ShapeDtypeStruct((G, Sq_pad, dv), q.dtype)]
    if return_attn:
        out_specs.append(pl.BlockSpec((1, tq_eff, Sk), lambda g, i: (g, i, 0)))
        out_shape.append(jax.ShapeDtypeStruct((G, Sq_pad, Sk), q.dtype))

    # Advisory cost estimate with real dtypes, including mask read / attn write.
    flops = 2 * G * Sq * Sk * dk + 2 * G * Sq * Sk * dv
    bytes_accessed = G * (Sq * dk + Sk * dk + Sk * dv + Sq * dv) * itemsize
    if has_mask:
        bytes_accessed += Gm * Sq * Sk            # int8 mask
    if return_attn:
        bytes_accessed += G * Sq * Sk * attn_itemsize

    vmem_limit = int(min(max(2 * vmem_estimate(tq_eff), 32 * 1024 * 1024),
                         64 * 1024 * 1024))

    outs = pl.pallas_call(
        functools.partial(_sdpa_kernel, has_mask=has_mask, return_attn=return_attn),
        out_shape=tuple(out_shape),
        grid_spec=pltpu.PrefetchScalarGridSpec(
            num_scalar_prefetch=0,
            grid=grid,
            in_specs=in_specs,
            out_specs=tuple(out_specs),
        ),
        compiler_params=pltpu.CompilerParams(
            dimension_semantics=("parallel", "parallel"),
            vmem_limit_bytes=vmem_limit,
        ),
        cost_estimate=pl.CostEstimate(
            flops=flops, transcendentals=G * Sq * Sk,
            bytes_accessed=bytes_accessed),
    )(*args)

    if return_attn:
        ctx3, attn3 = outs
    else:
        (ctx3,) = outs

    ctx = ctx3[:, :Sq, :].reshape(*lead, Sq, dv)
    if not return_attn:
        return ctx
    attn = attn3[:, :Sq, :].reshape(*lead, Sq, Sk)
    return ctx, attn


def _reference(q, k, v, attn_mask=None):
    s = jnp.einsum("...qd,...kd->...qk",
                   q.astype(jnp.float32), k.astype(jnp.float32)) / math.sqrt(D_K)
    if attn_mask is not None:
        s = jnp.where(attn_mask != 0, NEG_BIG, s)
    attn = jax.nn.softmax(s, axis=-1)
    ctx = jnp.einsum("...qk,...kd->...qd", attn, v.astype(jnp.float32))
    return ctx, attn


if __name__ == "__main__":
    key = jax.random.PRNGKey(0)
    kq, kk, kv = jax.random.split(key, 3)

    B, H, S = 2, 4, 128  # d_k = d_v = 64 fixed by the module
    q = jax.random.normal(kq, (B, H, S, D_K), dtype=jnp.float32)
    k = jax.random.normal(kk, (B, H, S, D_K), dtype=jnp.float32)
    v = jax.random.normal(kv, (B, H, S, D_V), dtype=jnp.float32)

    # Path 1: no mask, f32.
    ctx, attn = jax.block_until_ready(scaled_dot_product_attention(q, k, v))
    ctx_r, attn_r = _reference(q, k, v)
    assert ctx.shape == (B, H, S, D_V) and attn.shape == (B, H, S, S)
    assert jnp.allclose(ctx, ctx_r, atol=1e-4, rtol=1e-4)
    assert jnp.allclose(attn, attn_r, atol=1e-4, rtol=1e-4)

    # Path 2: full causal boolean mask (True = masked out), per-head.
    causal = jnp.triu(jnp.ones((S, S), dtype=jnp.bool_), k=1)
    mask_full = jnp.broadcast_to(causal, (B, H, S, S))
    ctx_m, attn_m = jax.block_until_ready(
        scaled_dot_product_attention(q, k, v, mask_full))
    ctx_mr, attn_mr = _reference(q, k, v, mask_full)
    assert jnp.allclose(ctx_m, ctx_mr, atol=1e-4, rtol=1e-4)
    assert jnp.allclose(attn_m, attn_mr, atol=1e-4, rtol=1e-4)

    # Path 3: head-broadcast padding mask (B, 1, S, S) — not replicated per head.
    pad_mask = (jax.random.uniform(jax.random.PRNGKey(1), (B, 1, 1, S)) < 0.25)
    pad_mask = jnp.broadcast_to(pad_mask, (B, 1, S, S))
    ctx_p, attn_p = jax.block_until_ready(
        scaled_dot_product_attention(q, k, v, pad_mask))
    ctx_pr, attn_pr = _reference(q, k, v, pad_mask)
    assert jnp.allclose(ctx_p, ctx_pr, atol=1e-4, rtol=1e-4)
    assert jnp.allclose(attn_p, attn_pr, atol=1e-4, rtol=1e-4)

    # Path 4: no-attn fast path (context only).
    ctx_only = jax.block_until_ready(
        scaled_dot_product_attention(q, k, v, mask_full, return_attn=False))
    assert jnp.allclose(ctx_only, ctx_mr, atol=1e-4, rtol=1e-4)

    # Path 5: bf16 inputs (native-rate MXU path), looser tolerance.
    q16, k16, v16 = (x.astype(jnp.bfloat16) for x in (q, k, v))
    ctx_b, attn_b = jax.block_until_ready(
        scaled_dot_product_attention(q16, k16, v16, mask_full))
    ctx_br, attn_br = _reference(q16, k16, v16, mask_full)
    assert ctx_b.dtype == jnp.bfloat16 and attn_b.dtype == jnp.bfloat16
    assert jnp.allclose(ctx_b.astype(jnp.float32), ctx_br, atol=3e-2, rtol=3e-2)
    assert jnp.allclose(attn_b.astype(jnp.float32), attn_br, atol=3e-2, rtol=3e-2)

    print("KERNEL_OK")
</pallas_src>

<mosaic_0001>
module attributes {stable_mosaic.version = 11 : i64} {
  func.func @_sdpa_kernel(%arg0: i32, %arg1: i32, %arg2: memref<1x128x64xf32, #tpu.memory_space<vmem>>, %arg3: memref<1x64x128xf32, #tpu.memory_space<vmem>>, %arg4: memref<1x128x64xf32, #tpu.memory_space<vmem>>, %arg5: memref<1x128x64xf32, #tpu.memory_space<vmem>>, %arg6: memref<1x128x128xf32, #tpu.memory_space<vmem>>) attributes {dimension_semantics = [#tpu.dimension_semantics<parallel>, #tpu.dimension_semantics<parallel>], iteration_bounds = array<i64: 8, 1>, scalar_prefetch = 0 : i64, scratch_operands = 0 : i64, tpu.core_type = #tpu.core_type<tc>, window_params = [{transform_indices = @transform_0, window_bounds = array<i64: 1, 128, 64>}, {transform_indices = @transform_1, window_bounds = array<i64: 1, 64, 128>}, {transform_indices = @transform_2, window_bounds = array<i64: 1, 128, 64>}, {transform_indices = @transform_3, window_bounds = array<i64: 1, 128, 64>}, {transform_indices = @transform_4, window_bounds = array<i64: 1, 128, 128>}]} {
    %c0 = arith.constant 0 : index
    %c0_0 = arith.constant 0 : index
    %c0_1 = arith.constant 0 : index
    %0 = vector.load %arg2[%c0, %c0_0, %c0_1] : memref<1x128x64xf32, #tpu.memory_space<vmem>>, vector<1x128x64xf32>
    %1 = vector.shape_cast %0 : vector<1x128x64xf32> to vector<128x64xf32>
    %c0_2 = arith.constant 0 : index
    %c0_3 = arith.constant 0 : index
    %c0_4 = arith.constant 0 : index
    %2 = vector.load %arg3[%c0_2, %c0_3, %c0_4] : memref<1x64x128xf32, #tpu.memory_space<vmem>>, vector<1x64x128xf32>
    %3 = vector.shape_cast %2 : vector<1x64x128xf32> to vector<64x128xf32>
    %c0_5 = arith.constant 0 : index
    %c0_6 = arith.constant 0 : index
    %c0_7 = arith.constant 0 : index
    %4 = vector.load %arg4[%c0_5, %c0_6, %c0_7] : memref<1x128x64xf32, #tpu.memory_space<vmem>>, vector<1x128x64xf32>
    %5 = vector.shape_cast %4 : vector<1x128x64xf32> to vector<128x64xf32>
    %cst = arith.constant dense<0.000000e+00> : vector<128x128xf32>
    %6 = tpu.matmul %1, %3, %cst {dimension_numbers = #tpu.dot_dimension_numbers<[1], [0], [0], [1], [0, 0, 1, 1], [], []>} : vector<128x64xf32>, vector<64x128xf32>, vector<128x128xf32> -> vector<128x128xf32>
    %cst_8 = arith.constant 1.250000e-01 : f32
    %7 = vector.broadcast %cst_8 : f32 to vector<128x128xf32>
    %8 = arith.mulf %6, %7 : vector<128x128xf32>
    %cst_9 = arith.constant dense<0xFF800000> : vector<128xf32>
    %9 = vector.multi_reduction <maximumf>, %8, %cst_9 [1] : vector<128x128xf32> to vector<128xf32>
    %10 = vector.shape_cast %9 : vector<128xf32> to vector<128x1xf32>
    %11 = vector.broadcast %10 : vector<128x1xf32> to vector<128x128xf32>
    %12 = arith.subf %8, %11 : vector<128x128xf32>
    %13 = math.exp %12 : vector<128x128xf32>
    %cst_10 = arith.constant dense<0.000000e+00> : vector<128xf32>
    %14 = vector.multi_reduction <add>, %13, %cst_10 [1] : vector<128x128xf32> to vector<128xf32>
    %15 = vector.shape_cast %14 : vector<128xf32> to vector<128x1xf32>
    %16 = tpu.reciprocal %15 : vector<128x1xf32> -> vector<128x1xf32>
    %cst_11 = arith.constant dense<0.000000e+00> : vector<128x64xf32>
    %17 = tpu.matmul %13, %5, %cst_11 {dimension_numbers = #tpu.dot_dimension_numbers<[1], [0], [0], [1], [0, 0, 1, 1], [], []>} : vector<128x128xf32>, vector<128x64xf32>, vector<128x64xf32> -> vector<128x64xf32>
    %18 = vector.broadcast %16 : vector<128x1xf32> to vector<128x64xf32>
    %19 = arith.mulf %17, %18 : vector<128x64xf32>
    %c0_12 = arith.constant 0 : index
    %c0_13 = arith.constant 0 : index
    %c0_14 = arith.constant 0 : index
    %20 = vector.load %arg5[%c0_12, %c0_13, %c0_14] : memref<1x128x64xf32, #tpu.memory_space<vmem>>, vector<1x128x64xf32>
    %21 = vector.shape_cast %20 : vector<1x128x64xf32> to vector<128x64xf32>
    %22 = vector.shape_cast %19 : vector<128x64xf32> to vector<1x128x64xf32>
    tpu.vector_store %arg5[%c0_12, %c0_13, %c0_14], %22 {strides = array<i32>} : memref<1x128x64xf32, #tpu.memory_space<vmem>>, vector<1x128x64xf32>,
    %23 = vector.broadcast %16 : vector<128x1xf32> to vector<128x128xf32>
    %24 = arith.mulf %13, %23 : vector<128x128xf32>
    %c0_15 = arith.constant 0 : index
    %c0_16 = arith.constant 0 : index
    %c0_17 = arith.constant 0 : index
    %25 = vector.load %arg6[%c0_15, %c0_16, %c0_17] : memref<1x128x128xf32, #tpu.memory_space<vmem>>, vector<1x128x128xf32>
    %26 = vector.shape_cast %25 : vector<1x128x128xf32> to vector<128x128xf32>
    %27 = vector.shape_cast %24 : vector<128x128xf32> to vector<1x128x128xf32>
    tpu.vector_store %arg6[%c0_15, %c0_16, %c0_17], %27 {strides = array<i32>} : memref<1x128x128xf32, #tpu.memory_space<vmem>>, vector<1x128x128xf32>,
    return
  }
  func.func @transform_0(%arg0: i32, %arg1: i32) -> (i32, i32, i32) {
    %c0_i32 = arith.constant 0 : i32
    %c0_i32_0 = arith.constant 0 : i32
    return %arg0, %arg1, %c0_i32 : i32, i32, i32
  }
  func.func @transform_1(%arg0: i32, %arg1: i32) -> (i32, i32, i32) {
    %c0_i32 = arith.constant 0 : i32
    %c0_i32_0 = arith.constant 0 : i32
    %c0_i32_1 = arith.constant 0 : i32
    return %arg0, %c0_i32, %c0_i32_0 : i32, i32, i32
  }
  func.func @transform_2(%arg0: i32, %arg1: i32) -> (i32, i32, i32) {
    %c0_i32 = arith.constant 0 : i32
    %c0_i32_0 = arith.constant 0 : i32
    %c0_i32_1 = arith.constant 0 : i32
    return %arg0, %c0_i32, %c0_i32_0 : i32, i32, i32
  }
  func.func @transform_3(%arg0: i32, %arg1: i32) -> (i32, i32, i32) {
    %c0_i32 = arith.constant 0 : i32
    %c0_i32_0 = arith.constant 0 : i32
    return %arg0, %arg1, %c0_i32 : i32, i32, i32
  }
  func.func @transform_4(%arg0: i32, %arg1: i32) -> (i32, i32, i32) {
    %c0_i32 = arith.constant 0 : i32
    %c0_i32_0 = arith.constant 0 : i32
    return %arg0, %arg1, %c0_i32 : i32, i32, i32
  }
}

</mosaic_0001>

<bundles_post_ra>
// kernel: scaled_dot_product_attention.1
= control target key start
LH: loop header
LB: loop body
LE: loop exit
PB: predicated region body
PF: predicated region fallthrough
CT: control target
= control target key end

     0   :  { %10 = vsyncpa [#allocation3], 0  ;;  %s1966_s0 = inlined_call_operand.vmem [shape: f32[8,128,64], index: 0, kind: input, shape index: {}]   ;;  %s1967_s1 = inlined_call_operand.vmem [shape: f32[8,64,128], index: 1, kind: input, shape index: {}]   ;;  %s1968_s2 = inlined_call_operand.vmem [shape: f32[8,128,64], index: 2, kind: input, shape index: {}]   ;;  %s1969_s3 = inlined_call_operand.vmem [shape: f32[8,128,64], index: 3, kind: output, shape index: {0}]   ;;  %s1970_s4 = inlined_call_operand.hbm [shape: f32[8,128,128], index: 4, kind: output, shape index: {1}]  }
   0x1   :  { %12 = vsyncpa [#allocation3 + $0x1], 0  ;;  %s1532_s15 = smov 0   ;;  %s1534_s16 = smov 0  }
   0x2   :  { %s1536_s17 = smov 0   ;;  %s1538_s18 = smov 0  }
   0x3   :  { %s1540_s19 = smov 0   ;;  %s1542_s20 = smov 0  }
   0x4 LB: > { %s1047_s21 = sadd.s32 4294967295, %s1502_s20   ;;  %s1048_s22 = sadd.s32 4294967294, %s1502_s20   ;;  %s1502_s20 = sphi %s1542_s20, %s18_s20   ;;  %s1498_s19 = sphi %s1540_s19, %s1977_s19   ;;  %s1494_s18 = sphi %s1538_s18, %s1976_s18   ;;  %s1490_s17 = sphi %s1536_s17, %s1975_s17   ;;  %s1486_s16 = sphi %s1534_s16, %s1974_s16   ;;  %s1482_s15 = sphi %s1532_s15, %s1973_s15  }
   0x5   : > { %s30_s23 = sadd.s32 1, %s1498_s19  ;;  %s147_s24 = sadd.s32 1, %s1490_s17 }
   0x6   : > { %p32_p0 = scmp.ge.s32.totalorder %s30_s23, 8  ;;  %p157_p1 = scmp.ne.s32.totalorder %s1490_s17, %s1486_s16 }
   0x7   : > { %p158_p2 = scmp.eq.s32.totalorder %s1047_s21, 7  ;;  %p163_p3 = scmp.ne.s32.totalorder %s1486_s16, %s1482_s15 }
   0x8   : > { %s1979_s23 = smov (%p32_p0, %s30_s23), 0  ;;  %p164_p5 = scmp.eq.s32.totalorder %s1048_s22, 7 }
   0x9   : > { %p1572_p4 = por %p158_p2, %p157_p1  ;;  %s142_s26 = ssub.s32 %s1498_s19, %s1979_s23 }
   0xa   : > { %p1051_p6 = scmp.ge.s32.totalorder %s1502_s20, 1  ;;  %p145_p7 = scmp.eq.s32.totalorder %s142_s26, 0 }
   0xb   : > { %p1579_p8 = por %p164_p5, %p163_p3  ;;  %p211_p9 = scmp.lt.s32.totalorder %s1502_s20, 9 }
   0xc   : > { %s1585_s28 = scalar_select %p145_p7, %s1490_s17, %s147_s24  }
   0xd   : > { %p212_p10 = pnand %p1051_p6, %p211_p9 }
   0xe   : > { %p261_p11 = scmp.lt.s32.totalorder (!%p212_p10), %s1494_s18, 7  ;;  %vm331_vm0 = vcmask (!%p212_p10), 523264   ;;  %s257_s21 = sand.u32 (!%p212_p10), 1, %s1486_s16  }
   0xf   : > { %215 = sbr.rel (%p212_p10) target bundleno = 673 (0x2a1), region = 32  ;;  %s1052_s22 = sshll.u32 (!%p212_p10), %s257_s21, 7 }
  0x10   : > { %s1780_s24 = scalar_lea.vmem (!%p212_p10), [#allocation2], %s1052_s22  ;;  %s1086_s26 = sshll.u32 (!%p212_p10), %s1494_s18, 11 }
  0x11   : > { %s1857_s7 = scalar_lea.hbm (!%p212_p10), %s1970_s4, %s1086_s26  ;;  %s1504_s9 = smov (!%p212_p10), [#allocation2]  }
  0x12   : > { %s1428_s10 = sshll.u32 (!%p212_p10), %s1504_s9, 4  ;;  %s1429_s10 = int_to_ptr.vmem [resolvable:$false] %s1428_s10 }
  0x16   : > { %s262_s29 = scalar_select %p261_p11, %s1494_s18, 7 }
  0x17   : > { %s1866_s18 = scalar_lea.sflag [#allocation3], %s257_s21 }
  0x18   : > { %s1589_s30 = sshll.u32 %s262_s29, 7  ;;  %s1083_s5 = sshll.u32 %s262_s29, 6 }
  0x19   : > { %s1595_s8 = scalar_lea.vmem %s1966_s0, %s1589_s30  ;;  %s274_s11 = scalar_lea.vmem %s1967_s1, %s1083_s5 }
  0x1a   : > { %v307_v0 = vld [vmem:[%s274_s11] sm:$0xff]  ;;  %v308_v1 = vld [vmem:[%s274_s11 + $0x8] sm:$0xff]  ;;  %v309_v2 = vld [vmem:[%s274_s11 + $0x10] sm:$0xff]  ;;  %s1636_s14 = scalar_lea.vmem %s1968_s2, %s1589_s30  ;;  %s907_s29 = sshll.u32 %s1780_s24, 4  ;;  %s1859_s29 = int_to_ptr.vmem [resolvable:$true] %s907_s29 }
  0x1b   : > { %v1239_v3 = vpack.c.bf16 %v308_v1, %v307_v0  ;;  %v310_v4 = vld [vmem:[%s274_s11 + $0x18] sm:$0xff]  ;;  %v311_v6 = vld [vmem:[%s274_s11 + $0x20] sm:$0xff]  ;;  %v312_v7 = vld [vmem:[%s274_s11 + $0x28] sm:$0xff]  ;;  %p1431_p1 = scmp.lt.s32.totalorder %s1859_s29, %s1429_s10 }
  0x1c   : > { %v1243_v5 = vpack.c.bf16 %v310_v4, %v309_v2  ;;  %v291_v8 = vld [vmem:[%s1595_s8] sm:$0xff]  ;;  %v1247_v9 = vpack.c.bf16 %v312_v7, %v311_v6  ;;  %v313_v10 = vld [vmem:[%s274_s11 + $0x30] sm:$0xff]  ;;  %v314_v11 = vld [vmem:[%s274_s11 + $0x38] sm:$0xff]  ;;  %s1430_s11 = scalar_lea.vmem %s1429_s10, 4096 }
  0x1d   : > { %1240 = vmatprep.subr.bf16.mxu0 %v1239_v3  ;;  %1159 = vmatprep.mubr.msk.f32.mxu0 %vm331_vm0, %v291_v8  ;;  %v1251_v12 = vpack.c.bf16 %v314_v11, %v313_v10  ;;  %v292_v13 = vld [vmem:[%s1595_s8 + $0x8] sm:$0xff]  ;;  %v293_v14 = vld [vmem:[%s1595_s8 + $0x10] sm:$0xff]  ;;  %v294_v15 = vld [vmem:[%s1595_s8 + $0x18] sm:$0xff] }
  0x1e   : > { %1242 = vmatpush3.bf16.msra.mxu0 %v1239_v3  ;;  %v295_v16 = vld [vmem:[%s1595_s8 + $0x20] sm:$0xff]  ;;  %v296_v17 = vld [vmem:[%s1595_s8 + $0x28] sm:$0xff]  ;;  %v297_v18 = vld [vmem:[%s1595_s8 + $0x30] sm:$0xff] }
  0x1f   : > { %1244 = vmatprep.subr.bf16.mxu0 %v1243_v5  ;;  %v298_v19 = vld [vmem:[%s1595_s8 + $0x38] sm:$0xff]  ;;  %v299_v20 = vld [vmem:[%s1595_s8 + $0x40] sm:$0xff]  ;;  %v300_v21 = vld [vmem:[%s1595_s8 + $0x48] sm:$0xff] }
  0x20   : > { %v301_v22 = vld [vmem:[%s1595_s8 + $0x50] sm:$0xff]  ;;  %v302_v23 = vld [vmem:[%s1595_s8 + $0x58] sm:$0xff]  ;;  %v303_v24 = vld [vmem:[%s1595_s8 + $0x60] sm:$0xff] }
  0x21   : > { %v304_v25 = vld [vmem:[%s1595_s8 + $0x68] sm:$0xff]  ;;  %v305_v26 = vld [vmem:[%s1595_s8 + $0x70] sm:$0xff]  ;;  %v306_v27 = vld [vmem:[%s1595_s8 + $0x78] sm:$0xff]  ;;  %s1424_s8 = scalar_lea.vmem %s1859_s29, 2048 }
  0x22   : > { %1246 = vmatpush3.bf16.msra.mxu0 %v1243_v5  ;;  %v315_v28 = vld [vmem:[%s1636_s14] sm:$0xff]  ;;  %v316_v29 = vld [vmem:[%s1636_s14 + $0x8] sm:$0xff]  ;;  %v317_v30 = vld [vmem:[%s1636_s14 + $0x10] sm:$0xff]  ;;  %p1425_p12 = scmp.ne.s32.totalorder %s1859_s29, %s1424_s8  ;;  %p1432_p2 = scmp.lt.s32.totalorder %s1430_s11, %s1424_s8 }
  0x23   : > { %1248 = vmatprep.subr.bf16.mxu0 %v1247_v9  ;;  %v1255_v31 = vpack.c.bf16 %v316_v29, %v315_v28  ;;  %v318_v32 = vld [vmem:[%s1636_s14 + $0x18] sm:$0xff]  ;;  %v319_v34 = vld [vmem:[%s1636_s14 + $0x20] sm:$0xff]  ;;  %v320_v35 = vld [vmem:[%s1636_s14 + $0x28] sm:$0xff] }
  0x24   : > { %v1259_v33 = vpack.c.bf16 %v318_v32, %v317_v30  ;;  %v1263_v36 = vpack.c.bf16 %v320_v35, %v319_v34  ;;  %v321_v56 = vld [vmem:[%s1636_s14 + $0x30] sm:$0xff]  ;;  %v322_v57 = vld [vmem:[%s1636_s14 + $0x38] sm:$0xff]  ;;  %v323_v0 = vld [vmem:[%s1636_s14 + $0x40] sm:$0xff]  ;;  %p1426_p13 = pnand %p1425_p12, %p1572_p4  ;;  %p1433_p3 = por %p1432_p2, %p1431_p1 }
  0x25   : > { %1287 = vmatprep.subr.bf16.mxu1 %v1255_v31  ;;  %v1267_v60 = vpack.c.bf16 %v322_v57, %v321_v56  ;;  %v324_v1 = vld [vmem:[%s1636_s14 + $0x48] sm:$0xff]  ;;  %v325_v6 = vld [vmem:[%s1636_s14 + $0x50] sm:$0xff]  ;;  %v326_v7 = vld [vmem:[%s1636_s14 + $0x58] sm:$0xff] }
  0x26   : > { %1250 = vmatpush3.bf16.msra.mxu0 %v1247_v9  ;;  %1295 = vmatpush3.bf16.msra.mxu1 %v1255_v31  ;;  %v1271_v3 = vpack.c.bf16 %v324_v1, %v323_v0  ;;  %v1275_v8 = vpack.c.bf16 %v326_v7, %v325_v6  ;;  %p1427_p0 = pneg %p1426_p13 }
  0x27   : > { %1252 = vmatprep.subr.bf16.mxu0 %v1251_v12  ;;  %1288 = vmatprep.subr.bf16.mxu1 %v1259_v33 }
  0x28   : > { %p1434_p5 = pnand %p1433_p3, %p1427_p0 }
  0x2a   : > { %1254 = vmatpush3.bf16.msra.mxu0 %v1251_v12  ;;  %1296 = vmatpush3.bf16.msra.mxu1 %v1259_v33  ;;  %v327_v12 = vld [vmem:[%s1636_s14 + $0x60] sm:$0xff] }
  0x2b   : > { %1256 = vmatprep.subr.bf16.mxu0 %v1255_v31  ;;  %1289 = vmatprep.subr.bf16.mxu1 %v1263_v36 }
  0x2d   : > { %1160 = vmatmul.mubr.msk.f32.vlgmr.msra.gmra.mrb[0].mxu0 %vm331_vm0, %v292_v13  ;;  %v328_v13 = vld [vmem:[%s1636_s14 + $0x68] sm:$0xff] }
  0x2e   : > { %1162 = vmatprep.mubr.msk.f32.mxu0 %vm331_vm0, %v293_v14  ;;  %1258 = vmatpush3.bf16.msra.mxu0 %v1255_v31  ;;  %v1279_v14 = vpack.c.bf16 %v328_v13, %v327_v12 }
  0x2f   : > { %1260 = vmatprep.subr.bf16.mxu0 %v1259_v33  ;;  %1297 = vmatpush3.bf16.msra.mxu1 %v1263_v36 }
  0x30   : > { %1290 = vmatprep.subr.bf16.mxu1 %v1267_v60 }
  0x31   : > { %1163 = vmatmul.mubr.msk.f32.gmra.mrb[2].mxu0 %vm331_vm0, %v294_v15 }
  0x32   : > { %1165 = vmatprep.mubr.msk.f32.mxu0 %vm331_vm0, %v295_v16  ;;  %1262 = vmatpush3.bf16.msra.mxu0 %v1259_v33  ;;  %v329_v16 = vld [vmem:[%s1636_s14 + $0x70] sm:$0xff] }
  0x33   : > { %1264 = vmatprep.subr.bf16.mxu0 %v1263_v36  ;;  %1298 = vmatpush3.bf16.msra.mxu1 %v1267_v60 }
  0x34   : > { %1291 = vmatprep.subr.bf16.mxu1 %v1271_v3 }
  0x35   : > { %1166 = vmatmul.mubr.msk.f32.gmra.mrb[4].mxu0 %vm331_vm0, %v296_v17  ;;  %v330_v17 = vld [vmem:[%s1636_s14 + $0x78] sm:$0xff] }
  0x36   : > { %1168 = vmatprep.mubr.msk.f32.mxu0 %vm331_vm0, %v297_v18  ;;  %1266 = vmatpush3.bf16.msra.mxu0 %v1263_v36  ;;  %v1283_v18 = vpack.c.bf16 %v330_v17, %v329_v16 }
  0x37   : > { %1268 = vmatprep.subr.bf16.mxu0 %v1267_v60  ;;  %1299 = vmatpush3.bf16.msra.mxu1 %v1271_v3 }
  0x38   : > { %1292 = vmatprep.subr.bf16.mxu1 %v1275_v8 }
  0x39   : > { %1169 = vmatmul.mubr.msk.f32.gmra.mrb[6].mxu0 %vm331_vm0, %v298_v19 }
  0x3a   : > { %1171 = vmatprep.mubr.msk.f32.mxu0 %vm331_vm0, %v299_v20  ;;  %1270 = vmatpush3.bf16.msra.mxu0 %v1267_v60 }
  0x3b   : > { %1272 = vmatprep.subr.bf16.mxu0 %v1271_v3  ;;  %1300 = vmatpush3.bf16.msra.mxu1 %v1275_v8 }
  0x3c   : > { %1293 = vmatprep.subr.bf16.mxu1 %v1279_v14 }
  0x3d   : > { %1172 = vmatmul.mubr.msk.f32.gmra.mrb[8].mxu0 %vm331_vm0, %v300_v21 }
  0x3e   : > { %1174 = vmatprep.mubr.msk.f32.mxu0 %vm331_vm0, %v301_v22  ;;  %1274 = vmatpush3.bf16.msra.mxu0 %v1271_v3 }
  0x3f   : > { %1276 = vmatprep.subr.bf16.mxu0 %v1275_v8  ;;  %1301 = vmatpush3.bf16.msra.mxu1 %v1279_v14 }
  0x40   : > { %1294 = vmatprep.subr.bf16.mxu1 %v1283_v18 }
  0x41   : > { %1175 = vmatmul.mubr.msk.f32.gmra.mrb[10].mxu0 %vm331_vm0, %v302_v23 }
  0x42   : > { %1177 = vmatprep.mubr.msk.f32.mxu0 %vm331_vm0, %v303_v24  ;;  %1278 = vmatpush3.bf16.msra.mxu0 %v1275_v8 }
  0x43   : > { %1280 = vmatprep.subr.bf16.mxu0 %v1279_v14  ;;  %1302 = vmatpush3.bf16.msra.mxu1 %v1283_v18 }
  0x45   : > { %1178 = vmatmul.mubr.msk.f32.gmra.mrb[12].mxu0 %vm331_vm0, %v304_v25 }
  0x46   : > { %1180 = vmatprep.mubr.msk.f32.mxu0 %vm331_vm0, %v305_v26  ;;  %1282 = vmatpush3.bf16.msra.mxu0 %v1279_v14 }
  0x47   : > { %1284 = vmatprep.subr.bf16.mxu0 %v1283_v18 }
  0x49   : > { %1181 = vmatmul.mubr.msk.f32.gmra.mrb[14].mxu0 %vm331_vm0, %v306_v27 }
  0x4a   : > { %1286 = vmatpush3.bf16.msra.mxu0 %v1283_v18 }
 0x100   : > { %v1161_v37 = vpop.f32.mrb[0].mxu0 }
 0x101   : > { %v446_v38 = vpop.f32.mrb[1].mxu0  ;;  %v1679_v4 = vmul.f32 0.125, %v1161_v37 }
 0x102   : > { %v1655_v49 = vmul.f32 0.125, %v446_v38 }
 0x104   : > { %v1644_v39 = vpop.f32.mrb[2].mxu0 }
 0x105   : > { %v456_v40 = vpop.f32.mrb[3].mxu0  ;;  %v1696_v15 = vmul.f32 0.125, %v1644_v39 }
 0x106   : > { %v1685_v9 = vmul.f32 0.125, %v456_v40 }
 0x108   : > { %v1167_v41 = vpop.f32.mrb[4].mxu0 }
 0x109   : > { %v1646_v42 = vmul.f32 0.125, %v1167_v41  ;;  %v466_v43 = vpop.f32.mrb[5].mxu0 }
 0x10a   : > { %v1649_v45 = vmul.f32 0.125, %v466_v43 }
 0x10b   : > { %551 = vmax.xlane.f32.xlu0 %v1646_v42 }
 0x10c   : > { %v1170_v44 = vpop.f32.mrb[6].mxu0 }
 0x10d   : > { %v1651_v46 = vmul.f32 0.125, %v1170_v44  ;;  %v476_v47 = vpop.f32.mrb[7].mxu0 }
 0x10e   : > { %v1657_v50 = vmul.f32 0.125, %v476_v47 }
 0x10f   : > { %549 = vmax.xlane.f32.xlu0 %v1649_v45  ;;  %555 = vmax.xlane.f32.xlu1 %v1651_v46 }
 0x110   : > { %v1173_v48 = vpop.f32.mrb[8].mxu0 }
 0x111   : > { %v486_v51 = vpop.f32.mrb[9].mxu0  ;;  %v1661_v52 = vmul.f32 0.125, %v1173_v48 }
 0x112   : > { %v1663_v53 = vmul.f32 0.125, %v486_v51 }
 0x113   : > { %541 = vmax.xlane.f32.xlu0 %v1655_v49  ;;  %553 = vmax.xlane.f32.xlu1 %v1657_v50 }
 0x114   : > { %v1176_v54 = vpop.f32.mrb[10].mxu0 }
 0x115   : > { %v496_v55 = vpop.f32.mrb[11].mxu0  ;;  %v1669_v58 = vmul.f32 0.125, %v1176_v54 }
 0x116   : > { %v1671_v59 = vmul.f32 0.125, %v496_v55 }
 0x117   : > { %559 = vmax.xlane.f32.xlu1 %v1661_v52  ;;  %557 = vmax.xlane.f32.xlu0 %v1663_v53 }
 0x118   : > { %v1179_v61 = vpop.f32.mrb[12].mxu0 }
 0x119   : > { %v506_v62 = vpop.f32.mrb[13].mxu0  ;;  %v1675_v63 = vmul.f32 0.125, %v1179_v61 }
 0x11a   : > { %v1687_v10 = vmul.f32 0.125, %v506_v62 }
 0x11b   : > { %563 = vmax.xlane.f32.xlu1 %v1669_v58  ;;  %561 = vmax.xlane.f32.xlu0 %v1671_v59 }
 0x11c   : > { %v1182_v2 = vpop.f32.mrb[14].mxu0 }
 0x11d   : > { %v516_v5 = vpop.f32.mrb[15].mxu0  ;;  %v1702_v19 = vmul.f32 0.125, %v1182_v2 }
 0x11e   : > { %v1691_v11 = vmul.f32 0.125, %v516_v5 }
 0x11f   : > { %543 = vmax.xlane.f32.xlu0 %v1679_v4  ;;  %567 = vmax.xlane.f32.xlu1 %v1675_v63 }
 0x123   : > { %545 = vmax.xlane.f32.xlu0 %v1685_v9  ;;  %565 = vmax.xlane.f32.xlu1 %v1687_v10 }
 0x127   : > { %547 = vmax.xlane.f32.xlu0 %v1696_v15  ;;  %569 = vmax.xlane.f32.xlu1 %v1691_v11 }
 0x12b   : > { %571 = vmax.xlane.f32.xlu1 %v1702_v19 }
 0x198   : > { %v552_v20 = vpop.xlane.xlu0 %551 }
 0x199   : > { %v578_v21 = vsub.f32 %v1646_v42, %v552_v20 }
 0x19b   : > { %v599_v25 = vmul.f32 1.442695, %v578_v21 }
 0x19c   : > { %v550_v22 = vpop.xlane.xlu0 %549  ;;  %v556_v23 = vpop.xlane.xlu1 %555 }
 0x19d   : > { %v577_v24 = vsub.f32 %v1649_v45, %v550_v22  ;;  %v580_v27 = vsub.f32 %v1651_v46, %v556_v23 }
 0x19f   : > { %v597_v26 = vmul.f32 1.442695, %v577_v24  ;;  %v603_v32 = vmul.f32 1.442695, %v580_v27 }
 0x1a0   : > { %v542_v28 = vpop.xlane.xlu0 %541  ;;  %v554_v29 = vpop.xlane.xlu1 %553 }
 0x1a1   : > { %1360 = vpow2.f32 %v597_v26  ;;  %v573_v30 = vsub.f32 %v1655_v49, %v542_v28  ;;  %v579_v31 = vsub.f32 %v1657_v50, %v554_v29 }
 0x1a2   : > { %1362 = vpow2.f32 %v599_v25 }
 0x1a3   : > { %v589_v33 = vmul.f32 1.442695, %v573_v30  ;;  %v601_v34 = vmul.f32 1.442695, %v579_v31 }
 0x1a4   : > { %v560_v35 = vpop.xlane.xlu1 %559  ;;  %v558_v36 = vpop.xlane.xlu0 %557 }
 0x1a5   : > { %1364 = vpow2.f32 %v589_v33  ;;  %v582_v37 = vsub.f32 %v1661_v52, %v560_v35  ;;  %v581_v38 = vsub.f32 %v1663_v53, %v558_v36 }
 0x1a6   : > { %1366 = vpow2.f32 %v601_v34 }
 0x1a7   : > { %1368 = vpow2.f32 %v603_v32  ;;  %v607_v39 = vmul.f32 1.442695, %v582_v37  ;;  %v605_v40 = vmul.f32 1.442695, %v581_v38 }
 0x1a8   : > { %v564_v41 = vpop.xlane.xlu1 %563  ;;  %v562_v42 = vpop.xlane.xlu0 %561 }
 0x1a9   : > { %1370 = vpow2.f32 %v607_v39  ;;  %v584_v43 = vsub.f32 %v1669_v58, %v564_v41  ;;  %v583_v44 = vsub.f32 %v1671_v59, %v562_v42 }
 0x1aa   : > { %1372 = vpow2.f32 %v605_v40 }
 0x1ab   : > { %v1714_v45 = vpop.eup %1360  ;;  %v611_v46 = vmul.f32 1.442695, %v584_v43  ;;  %v609_v47 = vmul.f32 1.442695, %v583_v44 }
 0x1ac   : > { %v1716_v48 = vpop.eup %1362  ;;  %1221 = vmatprep.mubr.f32.mxu1 %v1714_v45  ;;  %v544_v49 = vpop.xlane.xlu0 %543 }
 0x1ad   : > { %v568_v50 = vpop.xlane.xlu1 %567  ;;  %1374 = vpow2.f32 %v611_v46  ;;  %v574_v51 = vsub.f32 %v1679_v4, %v544_v49  ;;  %1222 = vmatmul.mubr.f32.vlgmr.msra.gmra.mrb[0].mxu1 %v1716_v48 }
 0x1ae   : > { %1376 = vpow2.f32 %v609_v47  ;;  %v586_v54 = vsub.f32 %v1675_v63, %v568_v50 }
 0x1af   : > { %v1721_v52 = vpop.eup %1364  ;;  %v591_v53 = vmul.f32 1.442695, %v574_v51 }
 0x1b0   : > { %v1724_v55 = vpop.eup %1366  ;;  %1215 = vmatprep.mubr.f32.mxu0 %v1721_v52  ;;  %621 = vadd.xlane.f32.xlu0 %v1721_v52  ;;  %v546_v56 = vpop.xlane.xlu0 %545  ;;  %v615_v62 = vmul.f32 1.442695, %v586_v54 }
 0x1b1   : > { %v566_v57 = vpop.xlane.xlu1 %565  ;;  %v1728_v58 = vpop.eup %1368  ;;  %1378 = vpow2.f32 %v591_v53  ;;  %1224 = vmatprep.mubr.f32.mxu1 %v1724_v55  ;;  %v575_v59 = vsub.f32 %v1685_v9, %v546_v56 }
 0x1b2   : > { %v585_v60 = vsub.f32 %v1687_v10, %v566_v57  ;;  %1225 = vmatmul.mubr.f32.gmra.mrb[2].mxu1 %v1728_v58 }
 0x1b3   : > { %v1734_v61 = vpop.eup %1370  ;;  %v593_v63 = vmul.f32 1.442695, %v575_v59 }
 0x1b4   : > { %v613_v0 = vmul.f32 1.442695, %v585_v60  ;;  %v1736_v1 = vpop.eup %1372  ;;  %v548_v2 = vpop.xlane.xlu0 %547 }
 0x1b5   : > { %v570_v3 = vpop.xlane.xlu1 %569  ;;  %1380 = vpow2.f32 %v593_v63  ;;  %1227 = vmatprep.mubr.f32.mxu1 %v1736_v1  ;;  %v576_v4 = vsub.f32 %v1696_v15, %v548_v2 }
 0x1b6   : > { %v587_v5 = vsub.f32 %v1691_v11, %v570_v3  ;;  %1382 = vpow2.f32 %v613_v0  ;;  %1228 = vmatmul.mubr.f32.gmra.mrb[4].mxu1 %v1734_v61 }
 0x1b7   : > { %v1742_v6 = vpop.eup %1374  ;;  %1384 = vpow2.f32 %v615_v62  ;;  %v595_v7 = vmul.f32 1.442695, %v576_v4 }
 0x1b8   : > { %v617_v8 = vmul.f32 1.442695, %v587_v5  ;;  %v1744_v9 = vpop.eup %1376 }
 0x1b9   : > { %v572_v10 = vpop.xlane.xlu1 %571  ;;  %1386 = vpow2.f32 %v595_v7  ;;  %1230 = vmatprep.mubr.f32.mxu1 %v1744_v9 }
 0x1ba   : > { %v588_v12 = vsub.f32 %v1702_v19, %v572_v10  ;;  %1388 = vpow2.f32 %v617_v8  ;;  %1231 = vmatmul.mubr.f32.gmra.mrb[6].mxu1 %v1742_v6 }
 0x1bb   : > { %v1379_v11 = vpop.eup %1378 }
 0x1bc   : > { %v619_v13 = vmul.f32 1.442695, %v588_v12  ;;  %1216 = vmatmul.mubr.f32.vlgmr.msra.gmra.mrb[16].mxu0 %v1379_v11  ;;  %623 = vadd.xlane.f32.xlu1 %v1379_v11 }
 0x1be   : > { %1390 = vpow2.f32 %v619_v13 }
 0x1bf   : > { %v1381_v14 = vpop.eup %1380 }
 0x1c0   : > { %v1749_v15 = vpop.eup %1382  ;;  %625 = vadd.xlane.f32.xlu0 %v1381_v14  ;;  %1218 = vmatprep.mubr.f32.mxu0 %v1381_v14 }
 0x1c1   : > { %v1751_v16 = vpop.eup %1384  ;;  %1233 = vmatprep.mubr.f32.mxu1 %v1749_v15 }
 0x1c2   : > { %1234 = vmatmul.mubr.f32.gmra.mrb[8].mxu1 %v1751_v16 }
 0x1c3   : > { %v1387_v17 = vpop.eup %1386 }
 0x1c4   : > { %v1755_v18 = vpop.eup %1388  ;;  %629 = vadd.xlane.f32.xlu0 %v1714_v45  ;;  %1219 = vmatmul.mubr.f32.gmra.mrb[18].mxu0 %v1387_v17 }
 0x1c5   : > { %627 = vadd.xlane.f32.xlu1 %v1387_v17  ;;  %1236 = vmatprep.mubr.f32.mxu1 %v1755_v18 }
 0x1c8   : > { %v1759_v19 = vpop.eup %1390  ;;  %633 = vadd.xlane.f32.xlu0 %v1724_v55 }
 0x1c9   : > { %1237 = vmatmul.mubr.f32.gmra.mrb[10].mxu1 %v1759_v19  ;;  %631 = vadd.xlane.f32.xlu1 %v1716_v48 }
 0x1cc   : > { %637 = vadd.xlane.f32.xlu0 %v1736_v1 }
 0x1cd   : > { %635 = vadd.xlane.f32.xlu1 %v1728_v58 }
 0x1d0   : > { %641 = vadd.xlane.f32.xlu0 %v1744_v9 }
 0x1d1   : > { %639 = vadd.xlane.f32.xlu1 %v1734_v61 }
 0x1d4   : > { %645 = vadd.xlane.f32.xlu0 %v1749_v15 }
 0x1d5   : > { %643 = vadd.xlane.f32.xlu1 %v1742_v6 }
 0x1d8   : > { %649 = vadd.xlane.f32.xlu0 %v1755_v18 }
 0x1d9   : > { %647 = vadd.xlane.f32.xlu1 %v1751_v16 }
 0x1dd   : > { %651 = vadd.xlane.f32.xlu1 %v1759_v19 }
 0x23d   : > { %v622_v20 = vpop.xlane.xlu0 %621 }
 0x23e   : > { %1392 = vrcp.f32 %v622_v20 }
 0x248   : > { %v1776_v21 = vpop.eup %1392 }
 0x249   : > { %v846_v22 = vmul.f32 %v1776_v21, %v1721_v52  ;;  %v624_v23 = vpop.xlane.xlu1 %623 }
 0x24a   : > { %1394 = vrcp.f32 %v624_v23 }
 0x24b   : > { %862 = vst [vmem:[%s1780_s24] sm:$0xff] %v846_v22 }
 0x24d   : > { %v626_v24 = vpop.xlane.xlu0 %625 }
 0x24e   : > { %1396 = vrcp.f32 %v626_v24 }
 0x251   : > { %v630_v25 = vpop.xlane.xlu0 %629 }
 0x252   : > { %1398 = vrcp.f32 %v630_v25  ;;  %v628_v26 = vpop.xlane.xlu1 %627 }
 0x253   : > { %1400 = vrcp.f32 %v628_v26 }
 0x254   : > { %v1783_v27 = vpop.eup %1394 }
 0x255   : > { %v847_v28 = vmul.f32 %v1783_v27, %v1379_v11  ;;  %v634_v29 = vpop.xlane.xlu0 %633 }
 0x256   : > { %1402 = vrcp.f32 %v634_v29  ;;  %v632_v30 = vpop.xlane.xlu1 %631 }
 0x257   : > { %863 = vst [vmem:[%s1780_s24 + $0x8] sm:$0xff] %v847_v28  ;;  %1404 = vrcp.f32 %v632_v30 }
 0x258   : > { %v1787_v31 = vpop.eup %1396 }
 0x259   : > { %v848_v32 = vmul.f32 %v1787_v31, %v1381_v14  ;;  %v638_v33 = vpop.xlane.xlu0 %637 }
 0x25a   : > { %1406 = vrcp.f32 %v638_v33  ;;  %v636_v34 = vpop.xlane.xlu1 %635 }
 0x25b   : > { %864 = vst [vmem:[%s1780_s24 + $0x10] sm:$0xff] %v848_v32  ;;  %1408 = vrcp.f32 %v636_v34 }
 0x25c   : > { %v1791_v35 = vpop.eup %1398 }
 0x25d   : > { %v1793_v36 = vpop.eup %1400  ;;  %v850_v37 = vmul.f32 %v1791_v35, %v1714_v45  ;;  %v642_v38 = vpop.xlane.xlu0 %641 }
 0x25e   : > { %v849_v39 = vmul.f32 %v1793_v36, %v1387_v17  ;;  %1410 = vrcp.f32 %v642_v38  ;;  %v640_v40 = vpop.xlane.xlu1 %639 }
 0x25f   : > { %866 = vst [vmem:[%s1780_s24 + $0x20] sm:$0xff] %v850_v37  ;;  %1412 = vrcp.f32 %v640_v40 }
 0x260   : > { %v1799_v41 = vpop.eup %1402  ;;  %865 = vst [vmem:[%s1780_s24 + $0x18] sm:$0xff] %v849_v39 }
 0x261   : > { %v1802_v42 = vpop.eup %1404  ;;  %v852_v43 = vmul.f32 %v1799_v41, %v1724_v55  ;;  %v646_v44 = vpop.xlane.xlu0 %645 }
 0x262   : > { %v851_v45 = vmul.f32 %v1802_v42, %v1716_v48  ;;  %1414 = vrcp.f32 %v646_v44  ;;  %v644_v46 = vpop.xlane.xlu1 %643 }
 0x263   : > { %868 = vst [vmem:[%s1780_s24 + $0x30] sm:$0xff] %v852_v43  ;;  %1416 = vrcp.f32 %v644_v46 }
 0x264   : > { %v1809_v47 = vpop.eup %1406  ;;  %867 = vst [vmem:[%s1780_s24 + $0x28] sm:$0xff] %v851_v45 }
 0x265   : > { %v1812_v49 = vpop.eup %1408  ;;  %v854_v50 = vmul.f32 %v1809_v47, %v1736_v1  ;;  %v650_v51 = vpop.xlane.xlu0 %649 }
 0x266   : > { %v853_v52 = vmul.f32 %v1812_v49, %v1728_v58  ;;  %1418 = vrcp.f32 %v650_v51  ;;  %v648_v48 = vpop.xlane.xlu1 %647 }
 0x267   : > { %870 = vst [vmem:[%s1780_s24 + $0x40] sm:$0xff] %v854_v50  ;;  %1420 = vrcp.f32 %v648_v48 }
 0x268   : > { %v1819_v53 = vpop.eup %1410  ;;  %869 = vst [vmem:[%s1780_s24 + $0x38] sm:$0xff] %v853_v52 }
 0x269   : > { %v1822_v54 = vpop.eup %1412  ;;  %v856_v55 = vmul.f32 %v1819_v53, %v1744_v9 }
 0x26a   : > { %v855_v56 = vmul.f32 %v1822_v54, %v1734_v61  ;;  %v652_v57 = vpop.xlane.xlu1 %651 }
 0x26b   : > { %872 = vst [vmem:[%s1780_s24 + $0x50] sm:$0xff] %v856_v55  ;;  %1422 = vrcp.f32 %v652_v57 }
 0x26c   : > { %v1829_v58 = vpop.eup %1414  ;;  %871 = vst [vmem:[%s1780_s24 + $0x48] sm:$0xff] %v855_v56 }
 0x26d   : > { %v1832_v59 = vpop.eup %1416  ;;  %v858_v60 = vmul.f32 %v1829_v58, %v1749_v15 }
 0x26e   : > { %v857_v62 = vmul.f32 %v1832_v59, %v1742_v6 }
 0x26f   : > { %874 = vst [vmem:[%s1780_s24 + $0x60] sm:$0xff] %v858_v60 }
 0x270   : > { %v1839_v61 = vpop.eup %1418  ;;  %873 = vst [vmem:[%s1780_s24 + $0x58] sm:$0xff] %v857_v62 }
 0x271   : > { %v1842_v63 = vpop.eup %1420  ;;  %v860_v0 = vmul.f32 %v1839_v61, %v1755_v18 }
 0x272   : > { %v859_v1 = vmul.f32 %v1842_v63, %v1751_v16 }
 0x273   : > { %876 = vst [vmem:[%s1780_s24 + $0x70] sm:$0xff] %v860_v0 }
 0x274   : > { %875 = vst [vmem:[%s1780_s24 + $0x68] sm:$0xff] %v859_v1 }
 0x275   : > { %v1852_v2 = vpop.eup %1422 }
 0x276   : > { %v861_v3 = vmul.f32 %v1852_v2, %v1759_v19 }
 0x278   : > { %877 = vst [vmem:[%s1780_s24 + $0x78] sm:$0xff] %v861_v3 }
 0x279   : > { %1437 = shalt.err (!%p1434_p5)
}
 0x27a   : > { %s1438_s12 = scalar_lea.hbm %s1857_s7, 2048  ;;  %s1442_s21 = scalar_lea.hbm %s1970_s4, 16384 }
 0x27b   : > { %p1439_p6 = scmp.ne.s32.totalorder %s1857_s7, %s1438_s12  ;;  %p1443_p10 = scmp.lt.u32.totalorder %s1857_s7, %s1970_s4 }
 0x27c   : > { %p1444_p11 = scmp.lt.u32.totalorder %s1442_s21, %s1438_s12  ;;  %p1446_p13 = scmp.lt.u32.totalorder %s1438_s12, %s1857_s7 }
 0x27d   : > { %p1440_p7 = pnand %p1439_p6, %p1572_p4 }
 0x27e   : > { %p1445_p12 = por %p1444_p11, %p1443_p10 }
 0x27f   : > { %p1441_p9 = pneg %p1440_p7 }
 0x280   : > { %p1447_p0 = por %p1446_p13, %p1445_p12 }
 0x282   : > { %p1448_p1 = pnand %p1447_p0, %p1441_p9 }
 0x284   : > { %1451 = shalt.err (!%p1448_p1)
}
 0x285   : > { %s1505_s26 = smov 128   ;;  %s1506_s5 = smov 8   ;;  %v1223_v4 = vpop.f32.mrb[0].mxu1 }
 0x286   : > { %1303 = dma.vmem_to_hbm [thread:$0]  (%p1572_p4), %s1859_s29, 2048, %s1857_s7, %s1866_s18, %s1505_s26, %s1505_s26, %s1506_s5   ;;  %v819_v5 = vmul.f32 %v1802_v42, %v1223_v4  ;;  %v755_v6 = vpop.f32.mrb[1].mxu1 }
 0x287   : > { %s1894_s9 = scalar_lea.vmem %s1969_s3, %s1589_s30  ;;  %v818_v7 = vmul.f32 %v1791_v35, %v755_v6  ;;  %v1226_v8 = vpop.f32.mrb[2].mxu1 }
 0x288   : > { %835 = vst.msk [vmem:[%s1894_s9 + $0x28] sm:$0xff] %vm331_vm0, %v819_v5  ;;  %v821_v9 = vmul.f32 %v1812_v49, %v1226_v8  ;;  %v765_v10 = vpop.f32.mrb[3].mxu1 }
 0x289   : > { %834 = vst.msk [vmem:[%s1894_s9 + $0x20] sm:$0xff] %vm331_vm0, %v818_v7  ;;  %v820_v12 = vmul.f32 %v1799_v41, %v765_v10  ;;  %v1229_v11 = vpop.f32.mrb[4].mxu1 }
 0x28a   : > { %837 = vst.msk [vmem:[%s1894_s9 + $0x38] sm:$0xff] %vm331_vm0, %v821_v9  ;;  %v823_v13 = vmul.f32 %v1822_v54, %v1229_v11  ;;  %v775_v14 = vpop.f32.mrb[5].mxu1 }
 0x28b   : > { %836 = vst.msk [vmem:[%s1894_s9 + $0x30] sm:$0xff] %vm331_vm0, %v820_v12  ;;  %v822_v15 = vmul.f32 %v1809_v47, %v775_v14 }
 0x28c   : > { %839 = vst.msk [vmem:[%s1894_s9 + $0x48] sm:$0xff] %vm331_vm0, %v823_v13 }
 0x28d   : > { %838 = vst.msk [vmem:[%s1894_s9 + $0x40] sm:$0xff] %vm331_vm0, %v822_v15  ;;  %v1232_v16 = vpop.f32.mrb[6].mxu1 }
 0x28e   : > { %v825_v17 = vmul.f32 %v1832_v59, %v1232_v16  ;;  %v785_v18 = vpop.f32.mrb[7].mxu1 }
 0x28f   : > { %v824_v19 = vmul.f32 %v1819_v53, %v785_v18  ;;  %v1217_v20 = vpop.f32.mrb[16].mxu0 }
 0x290   : > { %841 = vst.msk [vmem:[%s1894_s9 + $0x58] sm:$0xff] %vm331_vm0, %v825_v17  ;;  %v815_v22 = vmul.f32 %v1783_v27, %v1217_v20  ;;  %v735_v23 = vpop.f32.mrb[17].mxu0 }
 0x291   : > { %840 = vst.msk [vmem:[%s1894_s9 + $0x50] sm:$0xff] %vm331_vm0, %v824_v19  ;;  %v814_v24 = vmul.f32 %v1776_v21, %v735_v23 }
 0x292   : > { %831 = vst.msk [vmem:[%s1894_s9 + $0x8] sm:$0xff] %vm331_vm0, %v815_v22 }
 0x293   : > { %830 = vst.msk [vmem:[%s1894_s9] sm:$0xff] %vm331_vm0, %v814_v24 }
 0x295   : > { %v1235_v25 = vpop.f32.mrb[8].mxu1 }
 0x296   : > { %v827_v26 = vmul.f32 %v1842_v63, %v1235_v25  ;;  %v795_v28 = vpop.f32.mrb[9].mxu1 }
 0x297   : > { %v826_v29 = vmul.f32 %v1829_v58, %v795_v28  ;;  %v1220_v27 = vpop.f32.mrb[18].mxu0 }
 0x298   : > { %843 = vst.msk [vmem:[%s1894_s9 + $0x68] sm:$0xff] %vm331_vm0, %v827_v26  ;;  %v817_v30 = vmul.f32 %v1793_v36, %v1220_v27  ;;  %v745_v32 = vpop.f32.mrb[19].mxu0 }
 0x299   : > { %842 = vst.msk [vmem:[%s1894_s9 + $0x60] sm:$0xff] %vm331_vm0, %v826_v29  ;;  %v816_v21 = vmul.f32 %v1787_v31, %v745_v32 }
 0x29a   : > { %833 = vst.msk [vmem:[%s1894_s9 + $0x18] sm:$0xff] %vm331_vm0, %v817_v30 }
 0x29b   : > { %832 = vst.msk [vmem:[%s1894_s9 + $0x10] sm:$0xff] %vm331_vm0, %v816_v21 }
 0x29c   : > { %v1238_v33 = vpop.f32.mrb[10].mxu1 }
 0x29d   : > { %v829_v34 = vmul.f32 %v1852_v2, %v1238_v33  ;;  %v805_v35 = vpop.f32.mrb[11].mxu1 }
 0x29e   : > { %v828_v37 = vmul.f32 %v1839_v61, %v805_v35 }
 0x29f   : > { %845 = vst.msk [vmem:[%s1894_s9 + $0x78] sm:$0xff] %vm331_vm0, %v829_v34 }
 0x2a0   : > { %844 = vst.msk [vmem:[%s1894_s9 + $0x70] sm:$0xff] %vm331_vm0, %v828_v37 }
 0x2a1 PF: > { %p1309_p4 = scmp.ge.s32.totalorder %s1502_s20, 2  ;;  %s934_s25 = sand.u32 1, %s1482_s15  }
 0x2a2   : > { %s935_s30 = scalar_lea.sflag [#allocation3], %s934_s25 }
 0x2a3   : > { %p1306_p2 = pnand %p1309_p4, %p1579_p8 }
 0x2a5   : > { %1477 = dma.done.wait (!%p1306_p2), %s935_s30, 2048  }
 0x2a6   : > { %1479 = vsyncadd (!%p1306_p2), %s935_s30, 4294965248  ;;  %s18_s20 = sadd.s32 1, %s1502_s20   ;;  %s1973_s15 = smov %s1486_s16 }
 0x2a7   : > { %p15_p3 = scmp.ge.s32.totalorder %s18_s20, 10   ;;  %s1974_s16 = smov %s1490_s17 }
 0x2a8   : > { %s1975_s17 = smov %s1585_s28  ;;  %s1976_s18 = smov %s1498_s19 }
 0x2a9   : > { %s1977_s19 = smov %s1979_s23  ;;  %17 = sbr.rel (!%p15_p3) target bundleno = 4 (0x4), region = 85 }
 0x2b0   :  { %940 = vsyncpa [#allocation3], 1 }
 0x2b1   :  { %942 = vsyncpa [#allocation3 + $0x1], 1 }

</bundles_post_ra>
